<compile_context>
chip_gen: v6e
topology: v6e:2x2x1
jax: 0.10.0
libtpu: 0.0.40
codegen_flags: <defaults>
</compile_context>

<pallas_src>
import functools

import jax
import jax.numpy as jnp
from jax import lax
from jax.experimental import pallas as pl
from jax.experimental.pallas import tpu as pltpu


def _round_up(a: int, b: int) -> int:
    return ((a + b - 1) // b) * b


def _linear_kernel(x_ref, w_ref, b_ref, o_ref, acc_ref):
    # x_ref:  (tm, tk)  input tile
    # w_ref:  (tn, tk)  weight tile in PyTorch (out, in) layout
    # b_ref:  (1, tn)   bias row tile
    # o_ref:  (tm, tn)  output tile
    # acc_ref:(tm, tn)  f32 accumulator scratch (resident across the K axis)
    k = pl.program_id(2)

    @pl.when(k == 0)
    def _():
        # Fold the bias add into the accumulator init (saves a VPU pass per step).
        acc_ref[...] = jnp.broadcast_to(
            b_ref[...].astype(jnp.float32), acc_ref.shape
        )

    # Contract last dims: (tm, tk) x (tn, tk) -> (tm, tn) on the MXU, f32 acc.
    acc_ref[...] += lax.dot_general(
        x_ref[...],
        w_ref[...],
        dimension_numbers=(((1,), (1,)), ((), ())),
        preferred_element_type=jnp.float32,
    )

    @pl.when(k == pl.num_programs(2) - 1)
    def _():
        # Activation is identity (module default).  A fused activation (e.g.
        # relu/gelu) would go here before the cast.
        o_ref[...] = acc_ref[...].astype(o_ref.dtype)


@functools.partial(jax.jit, static_argnames=("tm", "tn", "tk"))
def linear_forward(x, weight, bias, *, tm=256, tn=256, tk=512):
    """y = x @ weight.T + bias  (torch.nn.Linear semantics, no activation).

    weight is (out_features, in_features); no transpose is materialized.
    Arbitrary M/N/K are supported via zero-padding up to the tile multiples.
    """
    M, K = x.shape
    N, K2 = weight.shape
    assert K == K2 and bias.shape == (N,)

    # Effective tiles: as large as the defaults, but never larger than the
    # hardware-aligned problem itself.  tn/tk stay 128-multiples (lane-dense),
    # tm stays an 8-multiple (sublane).
    tm = min(tm, _round_up(M, 8))
    tn = min(tn, _round_up(N, 128))
    tk = min(tk, _round_up(K, 128))

    Mp, Np, Kp = _round_up(M, tm), _round_up(N, tn), _round_up(K, tk)

    xp = jnp.pad(x, ((0, Mp - M), (0, Kp - K))) if (Mp, Kp) != (M, K) else x
    wp = (
        jnp.pad(weight, ((0, Np - N), (0, Kp - K)))
        if (Np, Kp) != (N, K)
        else weight
    )
    bp = (jnp.pad(bias, (0, Np - N)) if Np != N else bias).reshape(1, Np)

    grid = (Mp // tm, Np // tn, Kp // tk)

    itemsize = x.dtype.itemsize
    bytes_accessed = (
        xp.size * xp.dtype.itemsize
        + wp.size * wp.dtype.itemsize
        + bp.size * bp.dtype.itemsize
        + Mp * Np * itemsize
    )
    cost = pl.CostEstimate(
        flops=2 * Mp * Np * Kp, transcendentals=0, bytes_accessed=bytes_accessed
    )

    # VMEM budget: double-buffered x/w/bias/out blocks + f32 accumulator,
    # with headroom, bounded so it also fits v7x's 64 MiB physical VMEM.
    vmem_need = (
        2 * (tm * tk + tn * tk + tn + tm * tn) * itemsize + tm * tn * 4
    )
    vmem_limit = int(min(max(2 * vmem_need, 16 << 20), 48 << 20))

    y_full = pl.pallas_call(
        _linear_kernel,
        out_shape=jax.ShapeDtypeStruct((Mp, Np), x.dtype),
        grid_spec=pltpu.PrefetchScalarGridSpec(
            num_scalar_prefetch=0,
            grid=grid,
            in_specs=[
                pl.BlockSpec((tm, tk), lambda i, j, k: (i, k)),  # x tile
                pl.BlockSpec((tn, tk), lambda i, j, k: (j, k)),  # weight (N,K) tile
                pl.BlockSpec((1, tn), lambda i, j, k: (0, j)),   # bias row tile
            ],
            out_specs=pl.BlockSpec((tm, tn), lambda i, j, k: (i, j)),
            scratch_shapes=[pltpu.VMEM((tm, tn), jnp.float32)],
        ),
        compiler_params=pltpu.CompilerParams(
            dimension_semantics=("parallel", "parallel", "arbitrary"),
            vmem_limit_bytes=vmem_limit,
        ),
        cost_estimate=cost,
    )(xp, wp, bp)

    return y_full[:M, :N] if (Mp, Np) != (M, N) else y_full


if __name__ == "__main__":
    key = jax.random.PRNGKey(0)

    # --- Case 1: small shapes consistent with the module: Linear(32, 16) ---
    batch, in_size, out_size = 8, 32, 16
    kx, kw, kb, key = jax.random.split(key, 4)
    bound = 1.0 / jnp.sqrt(jnp.float32(in_size))
    weight = jax.random.uniform(kw, (out_size, in_size), jnp.float32, -bound, bound)
    bias = jax.random.uniform(kb, (out_size,), jnp.float32, -bound, bound)
    x = jax.random.normal(kx, (batch, in_size), jnp.float32)

    y = jax.block_until_ready(linear_forward(x, weight, bias))
    y_ref = x @ weight.T + bias
    assert y.shape == (batch, out_size)
    assert jnp.allclose(y, y_ref, atol=1e-5, rtol=1e-5)

    # --- Case 2: multi-tile grid (exercises K-accumulation, N tiling, padding) ---
    batch2, in2, out2 = 192, 640, 384
    kx2, kw2, kb2, key = jax.random.split(key, 4)
    bound2 = 1.0 / jnp.sqrt(jnp.float32(in2))
    w2 = jax.random.uniform(kw2, (out2, in2), jnp.float32, -bound2, bound2)
    b2 = jax.random.uniform(kb2, (out2,), jnp.float32, -bound2, bound2)
    x2 = jax.random.normal(kx2, (batch2, in2), jnp.float32)

    y2 = jax.block_until_ready(linear_forward(x2, w2, b2))
    y2_ref = (
        jnp.dot(x2, w2.T, precision=jax.lax.Precision.HIGHEST) + b2
    )
    assert y2.shape == (batch2, out2)
    assert jnp.allclose(y2, y2_ref, atol=2e-3, rtol=2e-3)

    print("KERNEL_OK")
</pallas_src>

<mosaic_0001>
module attributes {stable_mosaic.version = 11 : i64} {
  func.func @_linear_kernel(%arg0: i32, %arg1: i32, %arg2: i32, %arg3: memref<8x128xf32, #tpu.memory_space<vmem>>, %arg4: memref<128x128xf32, #tpu.memory_space<vmem>>, %arg5: memref<1x128xf32, #tpu.memory_space<vmem>>, %arg6: memref<8x128xf32, #tpu.memory_space<vmem>>, %arg7: memref<8x128xf32, #tpu.memory_space<vmem>>) attributes {dimension_semantics = [#tpu.dimension_semantics<parallel>, #tpu.dimension_semantics<parallel>, #tpu.dimension_semantics<arbitrary>], iteration_bounds = array<i64: 1, 1, 1>, scalar_prefetch = 0 : i64, scratch_operands = 1 : i64, tpu.core_type = #tpu.core_type<tc>, window_params = [{transform_indices = @transform_0, window_bounds = array<i64: 8, 128>}, {transform_indices = @transform_1, window_bounds = array<i64: 128, 128>}, {transform_indices = @transform_2, window_bounds = array<i64: 1, 128>}, {transform_indices = @transform_3, window_bounds = array<i64: 8, 128>}]} {
    %c0_i32 = arith.constant 0 : i32
    %0 = arith.cmpi eq, %arg2, %c0_i32 : i32
    %1 = arith.extui %0 : i1 to i32
    %c0_i32_0 = arith.constant 0 : i32
    %2 = arith.cmpi ne, %1, %c0_i32_0 : i32
    scf.if %2 {
      %c0_10 = arith.constant 0 : index
      %c0_11 = arith.constant 0 : index
      %12 = vector.load %arg5[%c0_10, %c0_11] : memref<1x128xf32, #tpu.memory_space<vmem>>, vector<1x128xf32>
      %13 = vector.shape_cast %12 : vector<1x128xf32> to vector<1x128xf32>
      %14 = vector.broadcast %13 : vector<1x128xf32> to vector<8x128xf32>
      %c0_12 = arith.constant 0 : index
      %c0_13 = arith.constant 0 : index
      %15 = vector.load %arg7[%c0_12, %c0_13] : memref<8x128xf32, #tpu.memory_space<vmem>>, vector<8x128xf32>
      tpu.vector_store %arg7[%c0_12, %c0_13], %14 {strides = array<i32>} : memref<8x128xf32, #tpu.memory_space<vmem>>, vector<8x128xf32>,
    } else {
    }
    %c0 = arith.constant 0 : index
    %c0_1 = arith.constant 0 : index
    %3 = vector.load %arg7[%c0, %c0_1] : memref<8x128xf32, #tpu.memory_space<vmem>>, vector<8x128xf32>
    %c0_2 = arith.constant 0 : index
    %c0_3 = arith.constant 0 : index
    %4 = vector.load %arg3[%c0_2, %c0_3] : memref<8x128xf32, #tpu.memory_space<vmem>>, vector<8x128xf32>
    %c0_4 = arith.constant 0 : index
    %c0_5 = arith.constant 0 : index
    %5 = vector.load %arg4[%c0_4, %c0_5] : memref<128x128xf32, #tpu.memory_space<vmem>>, vector<128x128xf32>
    %cst = arith.constant dense<0.000000e+00> : vector<8x128xf32>
    %6 = tpu.matmul %4, %5, %cst {dimension_numbers = #tpu.dot_dimension_numbers<[1], [1], [0], [0], [0, 0, 1, 0], [], []>} : vector<8x128xf32>, vector<128x128xf32>, vector<8x128xf32> -> vector<8x128xf32>
    %7 = arith.addf %3, %6 : vector<8x128xf32>
    %c0_6 = arith.constant 0 : index
    %c0_7 = arith.constant 0 : index
    %8 = vector.load %arg7[%c0_6, %c0_7] : memref<8x128xf32, #tpu.memory_space<vmem>>, vector<8x128xf32>
    tpu.vector_store %arg7[%c0_6, %c0_7], %7 {strides = array<i32>} : memref<8x128xf32, #tpu.memory_space<vmem>>, vector<8x128xf32>,
    %c0_i32_8 = arith.constant 0 : i32
    %9 = arith.cmpi eq, %arg2, %c0_i32_8 : i32
    %10 = arith.extui %9 : i1 to i32
    %c0_i32_9 = arith.constant 0 : i32
    %11 = arith.cmpi ne, %10, %c0_i32_9 : i32
    scf.if %11 {
      %c0_10 = arith.constant 0 : index
      %c0_11 = arith.constant 0 : index
      %12 = vector.load %arg7[%c0_10, %c0_11] : memref<8x128xf32, #tpu.memory_space<vmem>>, vector<8x128xf32>
      %c0_12 = arith.constant 0 : index
      %c0_13 = arith.constant 0 : index
      %13 = vector.load %arg6[%c0_12, %c0_13] : memref<8x128xf32, #tpu.memory_space<vmem>>, vector<8x128xf32>
      tpu.vector_store %arg6[%c0_12, %c0_13], %12 {strides = array<i32>} : memref<8x128xf32, #tpu.memory_space<vmem>>, vector<8x128xf32>,
    } else {
    }
    return
  }
  func.func @transform_0(%arg0: i32, %arg1: i32, %arg2: i32) -> (i32, i32) {
    %c0_i32 = arith.constant 0 : i32
    return %arg0, %arg2 : i32, i32
  }
  func.func @transform_1(%arg0: i32, %arg1: i32, %arg2: i32) -> (i32, i32) {
    %c0_i32 = arith.constant 0 : i32
    return %arg1, %arg2 : i32, i32
  }
  func.func @transform_2(%arg0: i32, %arg1: i32, %arg2: i32) -> (i32, i32) {
    %c0_i32 = arith.constant 0 : i32
    %c0_i32_0 = arith.constant 0 : i32
    return %c0_i32, %arg1 : i32, i32
  }
  func.func @transform_3(%arg0: i32, %arg1: i32, %arg2: i32) -> (i32, i32) {
    %c0_i32 = arith.constant 0 : i32
    return %arg0, %arg1 : i32, i32
  }
}

</mosaic_0001>

<bundles_post_ra>
// kernel: linear_forward.1
= control target key start
LH: loop header
LB: loop body
LE: loop exit
PB: predicated region body
PF: predicated region fallthrough
CT: control target
= control target key end

     0   :  { %v214_v1 = vmov 0.0   ;;  %vm215_vm0 = vmmov 0   ;;  %s294_s0 = inlined_call_operand.vmem [shape: f32[8,128], index: 0, kind: input, shape index: {}]   ;;  %s295_s1 = inlined_call_operand.vmem [shape: f32[128,128], index: 1, kind: input, shape index: {}]   ;;  %s296_s2 = inlined_call_operand.vmem [shape: f32[1,128], index: 2, kind: input, shape index: {}]   ;;  %s297_s3 = inlined_call_operand.hbm [shape: f32[8,128], index: 3, kind: output, shape index: {}]  }
   0x1   :  { %v44_v0 = vld [vmem:[%s295_s1 + $0x78] sm:$0xff]  ;;  %154 = vmatprep.subr.mxu0 %v214_v1  ;;  %186 = vmatprep.mubr.msk.f32.mxu0 %vm215_vm0, %v214_v1  ;;  %v43_v2 = vld [vmem:[%s295_s1 + $0x70] sm:$0xff] }
   0x2   :  { %155 = vmatpush3.xpose.msra.mxu0 %v44_v0 }
   0x3   :  { %156 = vmatprep.subr.mxu0 %v214_v1 }
   0x6   :  { %157 = vmatpush3.xpose.msra.mxu0 %v43_v2 }
   0x7   :  { %8 = vsyncpa [#allocation4], 0  ;;  %158 = vmatprep.subr.mxu0 %v214_v1  ;;  %v42_v3 = vld [vmem:[%s295_s1 + $0x68] sm:$0xff]  ;;  %v41_v4 = vld [vmem:[%s295_s1 + $0x60] sm:$0xff]  ;;  %s216_s21 = smov [#allocation3]  }
   0x8   :  { %v40_v5 = vld [vmem:[%s295_s1 + $0x58] sm:$0xff]  ;;  %v39_v6 = vld [vmem:[%s295_s1 + $0x50] sm:$0xff]  ;;  %v38_v7 = vld [vmem:[%s295_s1 + $0x48] sm:$0xff]  ;;  %s128_s22 = sshll.u32 %s216_s21, 4  ;;  %s129_s22 = int_to_ptr.vmem [resolvable:$true] %s128_s22 }
   0x9   :  { %v37_v8 = vld [vmem:[%s295_s1 + $0x40] sm:$0xff]  ;;  %v36_v9 = vld [vmem:[%s295_s1 + $0x38] sm:$0xff]  ;;  %v35_v10 = vld [vmem:[%s295_s1 + $0x30] sm:$0xff]  ;;  %s192_s23 = scalar_lea.vmem %s129_s22, 128  ;;  %p197_p1 = scmp.lt.s32.totalorder %s129_s22, %s129_s22 }
   0xa   :  { %159 = vmatpush3.xpose.msra.mxu0 %v42_v3  ;;  %v34_v11 = vld [vmem:[%s295_s1 + $0x28] sm:$0xff]  ;;  %v33_v12 = vld [vmem:[%s295_s1 + $0x20] sm:$0xff]  ;;  %v32_v13 = vld [vmem:[%s295_s1 + $0x18] sm:$0xff]  ;;  %p193_p0 = scmp.ne.s32.totalorder %s129_s22, %s192_s23  ;;  %p198_p2 = scmp.lt.s32.totalorder %s192_s23, %s192_s23 }
   0xb   :  { %160 = vmatprep.subr.mxu0 %v214_v1  ;;  %v31_v14 = vld [vmem:[%s295_s1 + $0x10] sm:$0xff]  ;;  %v30_v15 = vld [vmem:[%s295_s1 + $0x8] sm:$0xff]  ;;  %v29_v16 = vld [vmem:[%s295_s1] sm:$0xff] }
   0xc   :  { %v28_v17 = vld [vmem:[%s294_s0] sm:$0xff]  ;;  %p199_p3 = por %p198_p2, %p197_p1 }
   0xd   :  { %v136_v18 = vld [vmem:[%s296_s2] ss:$0 sm:$0xff] }
   0xe   :  { %161 = vmatpush3.xpose.msra.mxu0 %v41_v4  ;;  %p200_p4 = pnand %p199_p3, %p193_p0 }
   0xf   :  { %162 = vmatprep.subr.mxu0 %v214_v1 }
  0x12   :  { %163 = vmatpush3.xpose.msra.mxu0 %v40_v5 }
  0x13   :  { %164 = vmatprep.subr.mxu0 %v214_v1 }
  0x16   :  { %165 = vmatpush3.xpose.msra.mxu0 %v39_v6 }
  0x17   :  { %166 = vmatprep.subr.mxu0 %v214_v1 }
  0x1a   :  { %167 = vmatpush3.xpose.msra.mxu0 %v38_v7 }
  0x1b   :  { %168 = vmatprep.subr.mxu0 %v214_v1 }
  0x1e   :  { %169 = vmatpush3.xpose.msra.mxu0 %v37_v8 }
  0x1f   :  { %170 = vmatprep.subr.mxu0 %v214_v1 }
  0x22   :  { %171 = vmatpush3.xpose.msra.mxu0 %v36_v9 }
  0x23   :  { %172 = vmatprep.subr.mxu0 %v214_v1 }
  0x26   :  { %173 = vmatpush3.xpose.msra.mxu0 %v35_v10 }
  0x27   :  { %174 = vmatprep.subr.mxu0 %v214_v1 }
  0x2a   :  { %175 = vmatpush3.xpose.msra.mxu0 %v34_v11 }
  0x2b   :  { %176 = vmatprep.subr.mxu0 %v214_v1 }
  0x2e   :  { %177 = vmatpush3.xpose.msra.mxu0 %v33_v12 }
  0x2f   :  { %178 = vmatprep.subr.mxu0 %v214_v1 }
  0x32   :  { %179 = vmatpush3.xpose.msra.mxu0 %v32_v13 }
  0x33   :  { %180 = vmatprep.subr.mxu0 %v214_v1 }
  0x36   :  { %181 = vmatpush3.xpose.msra.mxu0 %v31_v14 }
  0x37   :  { %182 = vmatprep.subr.mxu0 %v214_v1 }
  0x3a   :  { %183 = vmatpush3.xpose.msra.mxu0 %v30_v15 }
  0x3b   :  { %184 = vmatprep.subr.mxu0 %v214_v1 }
  0x3e   :  { %185 = vmatpush3.xpose.msra.mxu0 %v29_v16 }
  0x41   :  { %187 = vmatmul.mubr.f32.vlgmr.msra.gmra.mxu0 %v28_v17 }
 0x101   :  { %v111_v19 = vpop.f32.mrf.mxu0 }
 0x102   :  { %v115_v20 = vadd.f32 %v136_v18, %v111_v19 }
 0x103   :  { %v188_v21 = vpop.f32.mrf.mxu0 }
 0x104   :  { %121 = vst [vmem:[#allocation3] sm:$0xff] %v115_v20 }
 0x105   :  { %203 = shalt.err (!%p200_p4)
}
 0x106   :  { %131 = dma.vmem_to_hbm [thread:$0]  %s129_s22, 128, %s297_s3, [#allocation4]  }
 0x107   :  { %212 = dma.done.wait [#allocation4], 128  }
 0x108   :  { %213 = vsyncadd [#allocation4], 4294967168 }
 0x109   :  { %135 = vsyncpa [#allocation4], 1 }

</bundles_post_ra>
